<compile_context>
chip_gen: v7x
topology: tpu7x:2x2x1
jax: 0.10.0
libtpu: 0.0.40
codegen_flags: <defaults>
</compile_context>

<pallas_src>
import jax
import jax.numpy as jnp
from jax.experimental import pallas as pl
from jax.experimental.pallas import tpu as pltpu


def _make_kernel(elem_dtype):
    """Kernel closure; elem_dtype controls the bias-add/tanh dtype."""

    def critic_kernel(x_ref, w1t_ref, b1_ref, w2t_ref, b2_ref, w3_ref, b3_ref,
                      out_ref):
        x = x_ref[...]                        # (TILE_B, S)   batch rows
        w1t = w1t_ref[...]                    # (W, S)
        w2t = w2t_ref[...]                    # (W, W)
        w3 = w3_ref[...]                      # (W, 1)
        b1 = b1_ref[...]                      # (W, 1)
        b2 = b2_ref[...]                      # (W, 1)
        b3 = b3_ref[0]                        # scalar (SMEM)

        # C1: h1ᵀ = W1ᵀ xᵀ.  Contract both operands on their last axis so the
        # MXU consumes the batch-major state tile directly (no explicit xᵀ).
        z1 = jax.lax.dot_general(
            w1t, x, (((1,), (1,)), ((), ())),
            preferred_element_type=jnp.float32)            # (W, TILE_B) f32
        h1 = jnp.tanh(z1.astype(elem_dtype) + b1)          # lane-dense vregs

        # C2: h2ᵀ = W2ᵀ h1ᵀ.
        z2 = jnp.dot(w2t, h1, preferred_element_type=jnp.float32)
        h2 = jnp.tanh(z2.astype(elem_dtype) + b2)          # (W, TILE_B)

        # C3: value head as VPU multiply + sublane reduce (MXU not needed for
        # a 1-wide projection); accumulate the reduction in f32.
        v = jnp.sum((h2 * w3).astype(jnp.float32), axis=0, keepdims=True) + b3
        out_ref[...] = v                                   # (1, TILE_B) f32

    return critic_kernel


def critic_forward(state, params, *, block_rows=4096, compute_dtype=None):
    """state: (B, state_dim) f32/bf16; params: dict from init_critic_params."""
    B, state_dim = state.shape
    net_width = params["w1"].shape[1]

    # Only cast the input stream if the caller explicitly asked for a different
    # matmul/elementwise dtype (a wrapper astype is an extra HBM pass).
    cdt = jnp.dtype(compute_dtype) if compute_dtype is not None else state.dtype
    x = state if state.dtype == cdt else state.astype(cdt)

    # Batch tiling.  The batch rides the output's lane axis, so multi-tile
    # blocks must be multiples of 128; a single tile covering the whole batch
    # (block == full array dim) may be any size.  No wrapper-side padding.
    if B <= block_rows:
        tile_b = B
    else:
        tile_b = max(128, (min(block_rows, B) // 128) * 128)
    grid = (pl.cdiv(B, tile_b),)

    # Weights are stored as (in, out) like torch's x @ Wᵀ; transpose once here
    # (tiny, one-shot) for the batch-on-lanes layout.  Biases become columns.
    w1t = params["w1"].T.astype(cdt)                       # (W, S)
    w2t = params["w2"].T.astype(cdt)                       # (W, W)
    w3c = params["w3"].reshape(net_width, 1).astype(cdt)   # (W, 1)
    b1c = params["b1"].reshape(net_width, 1).astype(cdt)   # (W, 1)
    b2c = params["b2"].reshape(net_width, 1).astype(cdt)   # (W, 1)
    b3s = params["b3"].reshape(1).astype(jnp.float32)      # (1,) SMEM scalar

    itemsize = jnp.dtype(cdt).itemsize
    weight_bytes = (w1t.size + w2t.size + w3c.size + b1c.size + b2c.size) * itemsize + 4
    cost = pl.CostEstimate(
        flops=2 * B * (state_dim * net_width + net_width * net_width + net_width),
        transcendentals=2 * B * net_width,
        bytes_accessed=B * state_dim * itemsize + B * 4 + weight_bytes,
    )

    # Weights/biases: constant index_map -> DMA'd once, VMEM-resident all steps.
    const = lambda shape: pl.BlockSpec(shape, lambda i: (0, 0))

    out = pl.pallas_call(
        _make_kernel(cdt),
        out_shape=jax.ShapeDtypeStruct((1, B), jnp.float32),
        grid=grid,
        in_specs=[
            pl.BlockSpec((tile_b, state_dim), lambda i: (i, 0)),   # state tile
            const((net_width, state_dim)),                         # W1ᵀ
            const((net_width, 1)),                                 # b1 column
            const((net_width, net_width)),                         # W2ᵀ
            const((net_width, 1)),                                 # b2 column
            const((net_width, 1)),                                 # W3 column
            pl.BlockSpec(memory_space=pltpu.MemorySpace.SMEM),     # b3 scalar
        ],
        out_specs=pl.BlockSpec((1, tile_b), lambda i: (0, i)),     # lane-dense
        compiler_params=pltpu.CompilerParams(
            dimension_semantics=("parallel",),
        ),
        cost_estimate=cost,
    )(x, w1t, b1c, w2t, b2c, w3c, b3s)

    # (1, B) lane-dense slab -> (B, 1) to match the module's output shape.
    return out.reshape(B, 1)


def init_critic_params(key, state_dim, net_width):
    """Deterministic init mimicking torch.nn.Linear default U(-1/sqrt(fan_in), +)."""
    ks = jax.random.split(key, 6)

    def linear(kw, kb, fan_in, fan_out):
        bound = 1.0 / jnp.sqrt(jnp.float32(fan_in))
        w = jax.random.uniform(kw, (fan_in, fan_out), jnp.float32, -bound, bound)
        b = jax.random.uniform(kb, (1, fan_out), jnp.float32, -bound, bound)
        return w, b

    w1, b1 = linear(ks[0], ks[1], state_dim, net_width)
    w2, b2 = linear(ks[2], ks[3], net_width, net_width)
    w3, b3 = linear(ks[4], ks[5], net_width, 1)
    return {"w1": w1, "b1": b1, "w2": w2, "b2": b2, "w3": w3, "b3": b3}


def critic_reference(state, p):
    """Pure-JAX reference matching the PyTorch forward (full-precision matmuls)."""
    hp = jax.lax.Precision.HIGHEST
    v = jnp.tanh(jnp.dot(state, p["w1"], precision=hp) + p["b1"])
    v = jnp.tanh(jnp.dot(v, p["w2"], precision=hp) + p["b2"])
    return jnp.dot(v, p["w3"], precision=hp) + p["b3"]


if __name__ == "__main__":
    B, state_dim, net_width = 8, 16, 32   # small shapes consistent with the module

    key = jax.random.PRNGKey(0)
    k_x, k_p = jax.random.split(key)
    state = jax.random.normal(k_x, (B, state_dim), jnp.float32)
    params = init_critic_params(k_p, state_dim, net_width)

    # Single-tile path (tile == whole batch).
    out = jax.block_until_ready(critic_forward(state, params))
    ref = critic_reference(state, params)
    assert out.shape == (B, 1)
    assert jnp.allclose(out, ref, atol=1e-4, rtol=1e-4), "mismatch vs reference"

    # Non-multiple-of-8 batch, still single tile (full-dim block).
    state_r = jax.random.normal(jax.random.PRNGKey(1), (13, state_dim), jnp.float32)
    out_r = jax.block_until_ready(critic_forward(state_r, params))
    ref_r = critic_reference(state_r, params)
    assert out_r.shape == (13, 1)
    assert jnp.allclose(out_r, ref_r, atol=1e-4, rtol=1e-4), "mismatch (ragged)"

    # Multi-tile path with a partial last tile (B=300, tile=128, grid=3), no pad.
    state_m = jax.random.normal(jax.random.PRNGKey(2), (300, state_dim), jnp.float32)
    out_m = jax.block_until_ready(critic_forward(state_m, params, block_rows=128))
    ref_m = critic_reference(state_m, params)
    assert out_m.shape == (300, 1)
    assert jnp.allclose(out_m, ref_m, atol=1e-4, rtol=1e-4), "mismatch (multi-tile)"

    # bf16 elementwise path (v6e/v7x friendly) — looser tolerance is expected.
    out_b = jax.block_until_ready(
        critic_forward(state_m, params, block_rows=128, compute_dtype=jnp.bfloat16))
    assert out_b.shape == (300, 1)
    assert bool(jnp.all(jnp.isfinite(out_b)))
    assert float(jnp.max(jnp.abs(out_b - ref_m))) < 0.25, "bf16 path too far off"

    print("KERNEL_OK")
</pallas_src>

<mosaic_0001>
module attributes {stable_mosaic.version = 11 : i64} {
  func.func @critic_kernel(%arg0: i32, %arg1: memref<8x16xf32, #tpu.memory_space<vmem>>, %arg2: memref<32x16xf32, #tpu.memory_space<vmem>>, %arg3: memref<32x1xf32, #tpu.memory_space<vmem>>, %arg4: memref<32x32xf32, #tpu.memory_space<vmem>>, %arg5: memref<32x1xf32, #tpu.memory_space<vmem>>, %arg6: memref<32x1xf32, #tpu.memory_space<vmem>>, %arg7: memref<1xf32, #tpu.memory_space<smem>>, %arg8: memref<1x8xf32, #tpu.memory_space<vmem>>) attributes {dimension_semantics = [#tpu.dimension_semantics<parallel>], iteration_bounds = array<i64: 1>, scalar_prefetch = 0 : i64, scratch_operands = 0 : i64, tpu.core_type = #tpu.core_type<tc>, window_params = [{transform_indices = @transform_0, window_bounds = array<i64: 8, 16>}, {pipeline_mode = #tpu.pipeline_mode<synchronous>, transform_indices = @transform_1, window_bounds = array<i64: 32, 16>}, {pipeline_mode = #tpu.pipeline_mode<synchronous>, transform_indices = @transform_2, window_bounds = array<i64: 32, 1>}, {pipeline_mode = #tpu.pipeline_mode<synchronous>, transform_indices = @transform_3, window_bounds = array<i64: 32, 32>}, {pipeline_mode = #tpu.pipeline_mode<synchronous>, transform_indices = @transform_4, window_bounds = array<i64: 32, 1>}, {pipeline_mode = #tpu.pipeline_mode<synchronous>, transform_indices = @transform_5, window_bounds = array<i64: 32, 1>}, {transform_indices = @transform_6, window_bounds = array<i64: 1>}, {transform_indices = @transform_7, window_bounds = array<i64: 1, 8>}]} {
    %c0 = arith.constant 0 : index
    %c0_0 = arith.constant 0 : index
    %0 = vector.load %arg1[%c0, %c0_0] : memref<8x16xf32, #tpu.memory_space<vmem>>, vector<8x16xf32>
    %c0_1 = arith.constant 0 : index
    %c0_2 = arith.constant 0 : index
    %1 = vector.load %arg2[%c0_1, %c0_2] : memref<32x16xf32, #tpu.memory_space<vmem>>, vector<32x16xf32>
    %c0_3 = arith.constant 0 : index
    %c0_4 = arith.constant 0 : index
    %2 = vector.load %arg4[%c0_3, %c0_4] : memref<32x32xf32, #tpu.memory_space<vmem>>, vector<32x32xf32>
    %c0_5 = arith.constant 0 : index
    %c0_6 = arith.constant 0 : index
    %3 = vector.load %arg6[%c0_5, %c0_6] : memref<32x1xf32, #tpu.memory_space<vmem>>, vector<32x1xf32>
    %c0_7 = arith.constant 0 : index
    %c0_8 = arith.constant 0 : index
    %4 = vector.load %arg3[%c0_7, %c0_8] : memref<32x1xf32, #tpu.memory_space<vmem>>, vector<32x1xf32>
    %c0_9 = arith.constant 0 : index
    %c0_10 = arith.constant 0 : index
    %5 = vector.load %arg5[%c0_9, %c0_10] : memref<32x1xf32, #tpu.memory_space<vmem>>, vector<32x1xf32>
    %c0_11 = arith.constant 0 : index
    %6 = memref.load %arg7[%c0_11] : memref<1xf32, #tpu.memory_space<smem>>
    %cst = arith.constant dense<0.000000e+00> : vector<32x8xf32>
    %7 = tpu.matmul %1, %0, %cst {dimension_numbers = #tpu.dot_dimension_numbers<[1], [1], [0], [0], [0, 0, 1, 0], [], []>} : vector<32x16xf32>, vector<8x16xf32>, vector<32x8xf32> -> vector<32x8xf32>
    %8 = vector.broadcast %4 : vector<32x1xf32> to vector<32x8xf32>
    %9 = arith.addf %7, %8 : vector<32x8xf32>
    %10 = math.tanh %9 : vector<32x8xf32>
    %cst_12 = arith.constant dense<0.000000e+00> : vector<32x8xf32>
    %11 = tpu.matmul %2, %10, %cst_12 {dimension_numbers = #tpu.dot_dimension_numbers<[1], [0], [0], [1], [0, 0, 1, 1], [], []>} : vector<32x32xf32>, vector<32x8xf32>, vector<32x8xf32> -> vector<32x8xf32>
    %12 = vector.broadcast %5 : vector<32x1xf32> to vector<32x8xf32>
    %13 = arith.addf %11, %12 : vector<32x8xf32>
    %14 = math.tanh %13 : vector<32x8xf32>
    %15 = vector.broadcast %3 : vector<32x1xf32> to vector<32x8xf32>
    %16 = arith.mulf %14, %15 : vector<32x8xf32>
    %cst_13 = arith.constant dense<0.000000e+00> : vector<8xf32>
    %17 = vector.multi_reduction <add>, %16, %cst_13 [0] : vector<32x8xf32> to vector<8xf32>
    %18 = vector.shape_cast %17 : vector<8xf32> to vector<1x8xf32>
    %19 = vector.broadcast %6 : f32 to vector<1x8xf32>
    %20 = arith.addf %18, %19 : vector<1x8xf32>
    %c0_14 = arith.constant 0 : index
    %c0_15 = arith.constant 0 : index
    %21 = vector.load %arg8[%c0_14, %c0_15] : memref<1x8xf32, #tpu.memory_space<vmem>>, vector<1x8xf32>
    tpu.vector_store %arg8[%c0_14, %c0_15], %20 {strides = array<i32>} : memref<1x8xf32, #tpu.memory_space<vmem>>, vector<1x8xf32>,
    return
  }
  func.func @transform_0(%arg0: i32) -> (i32, i32) {
    %c0_i32 = arith.constant 0 : i32
    %c0_i32_0 = arith.constant 0 : i32
    return %arg0, %c0_i32 : i32, i32
  }
  func.func @transform_1(%arg0: i32) -> (i32, i32) {
    %c0_i32 = arith.constant 0 : i32
    %c0_i32_0 = arith.constant 0 : i32
    %c0_i32_1 = arith.constant 0 : i32
    return %c0_i32, %c0_i32_0 : i32, i32
  }
  func.func @transform_2(%arg0: i32) -> (i32, i32) {
    %c0_i32 = arith.constant 0 : i32
    %c0_i32_0 = arith.constant 0 : i32
    %c0_i32_1 = arith.constant 0 : i32
    return %c0_i32, %c0_i32_0 : i32, i32
  }
  func.func @transform_3(%arg0: i32) -> (i32, i32) {
    %c0_i32 = arith.constant 0 : i32
    %c0_i32_0 = arith.constant 0 : i32
    %c0_i32_1 = arith.constant 0 : i32
    return %c0_i32, %c0_i32_0 : i32, i32
  }
  func.func @transform_4(%arg0: i32) -> (i32, i32) {
    %c0_i32 = arith.constant 0 : i32
    %c0_i32_0 = arith.constant 0 : i32
    %c0_i32_1 = arith.constant 0 : i32
    return %c0_i32, %c0_i32_0 : i32, i32
  }
  func.func @transform_5(%arg0: i32) -> (i32, i32) {
    %c0_i32 = arith.constant 0 : i32
    %c0_i32_0 = arith.constant 0 : i32
    %c0_i32_1 = arith.constant 0 : i32
    return %c0_i32, %c0_i32_0 : i32, i32
  }
  func.func @transform_6(%arg0: i32) -> i32 {
    %c0_i32 = arith.constant 0 : i32
    %c0_i32_0 = arith.constant 0 : i32
    return %c0_i32 : i32
  }
  func.func @transform_7(%arg0: i32) -> (i32, i32) {
    %c0_i32 = arith.constant 0 : i32
    %c0_i32_0 = arith.constant 0 : i32
    return %c0_i32, %arg0 : i32, i32
  }
}

</mosaic_0001>

<bundles_post_ra>
// kernel: tpu_custom_call.1
= control target key start
LH: loop header
LB: loop body
LE: loop exit
PB: predicated region body
PF: predicated region fallthrough
CT: control target
= control target key end

     0   :  { %vm70_vm0 = vcmask 130048   ;;  %v449_v4 = vmov 0   ;;  %s579_s0 = inlined_call_operand.vmem [shape: f32[8,16], index: 0, kind: input, shape index: {}]   ;;  %s580_s1 = inlined_call_operand.vmem [shape: f32[32,16], index: 1, kind: input, shape index: {}]   ;;  %s581_s2 = inlined_call_operand.vmem [shape: f32[32,1], index: 2, kind: input, shape index: {}]   ;;  %s582_s3 = inlined_call_operand.vmem [shape: f32[32,32], index: 3, kind: input, shape index: {}]   ;;  %s583_s4 = inlined_call_operand.vmem [shape: f32[32,1], index: 4, kind: input, shape index: {}]   ;;  %s584_s5 = inlined_call_operand.vmem [shape: f32[32,1], index: 5, kind: input, shape index: {}]   ;;  %s585_s6 = inlined_call_operand.<no memory space> [shape: f32[1], index: 6, kind: input, shape index: {}]   ;;  %s586_s7 = inlined_call_operand.hbm [shape: f32[1,8], index: 7, kind: output, shape index: {}]  }
   0x1   :  { %v28_v0 = vld [vmem:[%s579_s0] sm:$0xff]  ;;  %v30_v3 = vld [vmem:[%s580_s1 + $0x8] sm:$0xff]  ;;  %407 = vset.pattern.permute.xlu0 %v449_v4  ;;  %v43_v5 = vld [vmem:[%s581_s2 + $0x10] sm:$0xff]  ;;  %408 = vset.pattern.permute.xlu1 %v449_v4 }
   0x2   :  { %v29_v1 = vld [vmem:[%s580_s1] sm:$0xff]  ;;  %375 = vmatprep.subr.msk.mxu0 %vm70_vm0, %v28_v0  ;;  %v31_v6 = vld [vmem:[%s580_s1 + $0x10] sm:$0xff]  ;;  %62 = vperm.xlu1 %408, %v43_v5   ;;  %v42_v7 = vld [vmem:[%s581_s2 + $0x8] sm:$0xff] }
   0x3   :  { %377 = vmatprep.mubr.msk.f32.mxu0 %vm70_vm0, %v29_v1  ;;  %v41_v2 = vld [vmem:[%s581_s2] sm:$0xff]  ;;  %376 = vmatpush3.xpose.msk.msra.mxu0 %vm70_vm0, %v28_v0  ;;  %v44_v8 = vld [vmem:[%s581_s2 + $0x18] sm:$0xff] }
   0x4   :  { %52 = vperm.xlu0 %407, %v41_v2  }
   0x6   :  { %378 = vmatmul.mubr.msk.f32.vlgmr.msra.gmra.mrb[0].mxu0 %vm70_vm0, %v30_v3 }
   0x7   :  { %13 = vsyncpa [#allocation4], 0  ;;  %380 = vmatprep.mubr.msk.f32.mxu0 %vm70_vm0, %v31_v6  ;;  %v32_v9 = vld [vmem:[%s580_s1 + $0x18] sm:$0xff]  ;;  %67 = vperm.xlu1 %408, %v44_v8   ;;  %v45_v10 = vld [vmem:[%s583_s4] sm:$0xff]  ;;  %vm195_vm1 = vcmask 261120   ;;  %vm321_vm2 = vcmask 64512  }
   0x8   :  { %57 = vperm.xlu0 %407, %v42_v7   ;;  %v46_v11 = vld [vmem:[%s583_s4 + $0x8] sm:$0xff]  ;;  %v47_v12 = vld [vmem:[%s583_s4 + $0x10] sm:$0xff]  ;;  %v48_v13 = vld [vmem:[%s583_s4 + $0x18] sm:$0xff]  ;;  %s450_s15 = smov [#allocation3]   ;;  %vm337_vm3 = vcmask 57344  }
   0x9   :  { %v37_v14 = vld [vmem:[%s584_s5] sm:$0xff]  ;;  %v38_v15 = vld [vmem:[%s584_s5 + $0x8] sm:$0xff]  ;;  %v39_v16 = vld [vmem:[%s584_s5 + $0x10] sm:$0xff]  ;;  %s345_s16 = sshll.u32 %s450_s15, 4  ;;  %s346_s16 = int_to_ptr.vmem [resolvable:$true] %s345_s16 }
   0xa   :  { %381 = vmatmul.mubr.msk.f32.gmra.mrb[2].mxu0 %vm70_vm0, %v32_v9  ;;  %v40_v17 = vld [vmem:[%s584_s5 + $0x18] sm:$0xff]  ;;  %v33_v18 = vld [vmem:[%s582_s3] sm:$0xff]  ;;  %v34_v37 = vld [vmem:[%s582_s3 + $0x8] sm:$0xff]  ;;  %s425_s17 = scalar_lea.vmem %s346_s16, 16  ;;  %s429_s18 = scalar_lea.vmem %s346_s16, 32 }
   0xb   :  { %182 = vperm.xlu1 %408, %v46_v11   ;;  %391 = vmatprep.mubr.msk.f32.mxu1 %vm195_vm1, %v33_v18  ;;  %v35_v38 = vld [vmem:[%s582_s3 + $0x10] sm:$0xff]  ;;  %v36_v39 = vld [vmem:[%s582_s3 + $0x18] sm:$0xff]  ;;  %p426_p0 = scmp.ne.s32.totalorder %s346_s16, %s425_s17  ;;  %p430_p1 = scmp.lt.s32.totalorder %s346_s16, %s346_s16 }
   0xc   :  { %177 = vperm.xlu0 %407, %v45_v10   ;;  %p431_p2 = scmp.lt.s32.totalorder %s429_s18, %s425_s17 }
   0xe   :  { %p432_p3 = por %p431_p2, %p430_p1 }
   0xf   :  { %192 = vperm.xlu1 %408, %v48_v13  }
  0x10   :  { %187 = vperm.xlu0 %407, %v47_v12   ;;  %v335_v12 = vstv %s585_s6  ;;  %p433_p4 = pnand %p432_p3, %p426_p0 }
  0x13   :  { %304 = vperm.xlu1 %408, %v38_v15  }
  0x14   :  { %299 = vperm.xlu0 %407, %v37_v14  }
  0x17   :  { %314 = vperm.xlu1 %408, %v40_v17  }
  0x18   :  { %309 = vperm.xlu0 %407, %v39_v16  }
  0x81   :  { %v63_v20 = vpop.permute.xlu1 %62 }
  0x83   :  { %v53_v19 = vpop.permute.xlu0 %52 }
  0x86   :  { %v68_v26 = vpop.permute.xlu1 %67 }
  0x87   :  { %v58_v21 = vpop.permute.xlu0 %57 }
  0x8a   :  { %v183_v40 = vpop.permute.xlu1 %182 }
  0x8b   :  { %v178_v41 = vpop.permute.xlu0 %177 }
  0x8e   :  { %v193_v46 = vpop.permute.xlu1 %192 }
  0x8f   :  { %v188_v48 = vpop.permute.xlu0 %187 }
  0x92   :  { %v305_v53 = vpop.permute.xlu1 %304 }
  0x93   :  { %v300_v52 = vpop.permute.xlu0 %299 }
  0x96   :  { %v315_v63 = vpop.permute.xlu1 %314 }
  0x97   :  { %v310_v62 = vpop.permute.xlu0 %309 }
  0xd9   :  { %v379_v22 = vpop.f32.mrb[0].mxu0 }
  0xda   :  { %v158_v23 = vadd.f32 %v379_v22, %v58_v21  ;;  %v152_v24 = vpop.f32.mrb[1].mxu0 }
  0xdb   :  { %v153_v25 = vadd.f32 %v152_v24, %v53_v19 }
  0xdc   :  { %409 = vtanh.f32 %v158_v23 }
  0xdd   :  { %411 = vtanh.f32 %v153_v25  ;;  %v382_v27 = vpop.f32.mrb[2].mxu0 }
  0xde   :  { %v168_v28 = vadd.f32 %v382_v27, %v68_v26  ;;  %v162_v29 = vpop.f32.mrb[3].mxu0 }
  0xdf   :  { %v163_v30 = vadd.f32 %v162_v29, %v63_v20 }
  0xe0   :  { %413 = vtanh.f32 %v168_v28 }
  0xe1   :  { %415 = vtanh.f32 %v163_v30 }
  0xe6   :  { %v410_v31 = vpop.eup %409 }
  0xe7   :  { %v412_v32 = vpop.eup %411 }
  0xe8   :  { %v397_v33 = vpack.c.bf16 %v410_v31, %v412_v32 }
  0xea   :  { %v414_v34 = vpop.eup %413  ;;  %398 = vmatprep.subr.bf16.mxu1 %v397_v33 }
  0xeb   :  { %v416_v35 = vpop.eup %415  ;;  %400 = vmatpush3.bf16.msra.mxu1 %v397_v33 }
  0xec   :  { %v401_v36 = vpack.c.bf16 %v414_v34, %v416_v35 }
  0xee   :  { %402 = vmatprep.subr.bf16.mxu1 %v401_v36 }
  0xef   :  { %404 = vmatpush3.bf16.msra.mxu1 %v401_v36 }
  0xf2   :  { %392 = vmatmul.mubr.msk.f32.vlgmr.msra.gmra.mrb[0].mxu1 %vm195_vm1, %v34_v37 }
  0xf3   :  { %394 = vmatprep.mubr.msk.f32.mxu1 %vm195_vm1, %v35_v38 }
  0xf6   :  { %395 = vmatmul.mubr.msk.f32.gmra.mrb[2].mxu1 %vm195_vm1, %v36_v39 }
 0x1c5   :  { %v393_v42 = vpop.f32.mrb[0].mxu1 }
 0x1c6   :  { %v280_v43 = vadd.f32 %v393_v42, %v183_v40  ;;  %v274_v44 = vpop.f32.mrb[1].mxu1 }
 0x1c7   :  { %v275_v45 = vadd.f32 %v274_v44, %v178_v41 }
 0x1c8   :  { %417 = vtanh.f32 %v280_v43 }
 0x1c9   :  { %419 = vtanh.f32 %v275_v45  ;;  %v396_v47 = vpop.f32.mrb[2].mxu1 }
 0x1ca   :  { %v290_v49 = vadd.f32 %v396_v47, %v193_v46  ;;  %v284_v50 = vpop.f32.mrb[3].mxu1 }
 0x1cb   :  { %v285_v51 = vadd.f32 %v284_v50, %v188_v48 }
 0x1cc   :  { %421 = vtanh.f32 %v290_v49 }
 0x1cd   :  { %423 = vtanh.f32 %v285_v51 }
 0x1d2   :  { %v418_v54 = vpop.eup %417 }
 0x1d3   :  { %v420_v55 = vpop.eup %419  ;;  %v318_v56 = vmul.f32 %v418_v54, %v305_v53 }
 0x1d4   :  { %v317_v57 = vmul.f32 %v420_v55, %v300_v52 }
 0x1d5   :  { %v323_v58 = vsel %vm321_vm2, %v318_v56, 0.0 }
 0x1d6   :  { %v422_v59 = vpop.eup %421  ;;  %v322_v60 = vsel %vm321_vm2, %v317_v57, 0.0 }
 0x1d7   :  { %v424_v61 = vpop.eup %423  ;;  %v324_v0 = vadd.f32 %v323_v58, %v322_v60  ;;  %v320_v1 = vmul.f32 %v422_v59, %v315_v63 }
 0x1d8   :  { %v319_v2 = vmul.f32 %v424_v61, %v310_v62 }
 0x1d9   :  { %v327_v5 = vsel %vm321_vm2, %v320_v1, 0.0 }
 0x1da   :  { %v325_v3 = vsel %vm321_vm2, %v319_v2, 0.0 }
 0x1db   :  { %v326_v4 = vadd.f32 %v325_v3, %v324_v0 }
 0x1dd   :  { %v328_v6 = vadd.f32 %v327_v5, %v326_v4 }
 0x1df   :  { %v329_v7 = vrot.slane %v328_v6, 4 }
 0x1e1   :  { %v330_v8 = vadd.f32 %v329_v7, %v328_v6 }
 0x1e3   :  { %v331_v9 = vrot.slane %v330_v8, 2 }
 0x1e5   :  { %v332_v10 = vadd.f32 %v331_v9, %v330_v8 }
 0x1e7   :  { %v333_v11 = vrot.slane %v332_v10, 1 }
 0x1e9   :  { %v334_v13 = vadd.f32 %v333_v11, %v332_v10 }
 0x1eb   :  { %v336_v14 = vadd.f32 %v335_v12, %v334_v13 }
 0x1ed   :  { %338 = vst.msk [vmem:[#allocation3] sm:$0x1] %vm337_vm3, %v336_v14 }
 0x1ee   :  { %436 = shalt.err (!%p433_p4)
}
 0x1ef   :  { %s437_s21 = scalar_lea.hbm %s586_s7, 16 }
 0x1f0   :  { %p438_p5 = scmp.ne.s32.totalorder %s586_s7, %s437_s21  ;;  %p441_p6 = scmp.lt.u32.totalorder %s437_s21, %s586_s7 }
 0x1f2   :  { %p443_p7 = pnand %p441_p6, %p438_p5 }
 0x1f4   :  { %446 = shalt.err (!%p443_p7)
}
 0x1f5   :  { %348 = dma.vmem_to_hbm [thread:$0]  %s346_s16, 16, %s586_s7, [#allocation4]  }
 0x1f6   :  { %447 = dma.done.wait [#allocation4], 16  }
 0x1f7   :  { %448 = vsyncadd [#allocation4], 4294967280 }
 0x1f8   :  { %352 = vsyncpa [#allocation4], 1 }

</bundles_post_ra>
